<compile_context>
chip_gen: v7x
topology: tpu7x:2x2x1
jax: 0.10.0
libtpu: 0.0.40
codegen_flags: <defaults>
</compile_context>

<pallas_src>
import functools

import jax
import jax.numpy as jnp
import numpy as np
from jax.experimental import pallas as pl
from jax.experimental.pallas import tpu as pltpu

_OUT_W = 128  # lane-dense merged-output width (one full vreg row of lanes)


def _actor_rnn_kernel(x_ref, w_ref, h0_ref, out_ref, xw_sc, *,
                      seq_len, input_size, hidden_size, n_actions):
    """Whole forward in one kernel invocation (no grid).

    x_ref  : (L, I)             f32  input sequence (seq-major, batch=1 squeezed)
    w_ref  : (I + 2H + 2, Wc)   f32  packed params, Wc = max(H, A):
               rows [0, I)      : W_ih^T    (lanes [0, H))
               rows [I, I+H)    : W_hh^T    (lanes [0, H))
               rows [I+H, I+2H) : W_lin^T   (lanes [0, A))
               row  I+2H        : b_ih+b_hh (lanes [0, H))
               row  I+2H+1      : b_lin     (lanes [0, A))
    h0_ref : (1, H)             f32
    out_ref: (2, 128)           f32  row 0 lanes[0:A) = log_softmax(logits)
                                     row 1 lanes[0:H) = h_n
    xw_sc  : (L, H)             f32  VMEM scratch for the input projection
    """
    I, H, A = input_size, hidden_size, n_actions

    wih = w_ref[0:I, 0:H]                               # (I, H)
    whh = w_ref[I:I + H, 0:H]                           # (H, H), invariant in vregs
    wlin = w_ref[I + H:I + 2 * H, 0:A]                  # (H, A)
    b_rnn = w_ref[I + 2 * H:I + 2 * H + 1, 0:H]         # (1, H) == b_ih + b_hh
    b_lin = w_ref[I + 2 * H + 1:I + 2 * H + 2, 0:A]     # (1, A)

    # One MXU push for every timestep's input projection (+ folded RNN bias).
    xw_sc[...] = (jnp.dot(x_ref[...], wih, preferred_element_type=jnp.float32)
                  + b_rnn)                              # (L, H)

    # Serial recurrence, fully unrolled; h stays in vregs (no VMEM round-trip).
    h = h0_ref[...]                                     # (1, H)
    for t in range(seq_len):
        pre = xw_sc[t:t + 1, :] + jnp.dot(h, whh,
                                          preferred_element_type=jnp.float32)
        h = jnp.tanh(pre)

    # Head: Linear + LogSoftmax(dim=-1).
    logits = jnp.dot(h, wlin, preferred_element_type=jnp.float32) + b_lin  # (1, A)
    m = jnp.max(logits, axis=-1, keepdims=True)
    shifted = logits - m
    lse = jnp.log(jnp.sum(jnp.exp(shifted), axis=-1, keepdims=True))
    logpi = shifted - lse

    # Single merged, lane-dense output buffer -> one write-back DMA.
    out_ref[...] = jnp.zeros_like(out_ref)
    out_ref[0:1, 0:A] = logpi
    out_ref[1:2, 0:H] = h


def prepare_params(params):
    """One-time packing of the PyTorch-layout parameters (perf review item #1).

    Call once and reuse: no per-call transpose / cast / concat ops are
    dispatched afterwards.
    """
    W_ih = jnp.asarray(params["W_ih"], jnp.float32)    # (H, I)  rnn.weight_ih_l0
    W_hh = jnp.asarray(params["W_hh"], jnp.float32)    # (H, H)  rnn.weight_hh_l0
    b_ih = jnp.asarray(params["b_ih"], jnp.float32)    # (H,)
    b_hh = jnp.asarray(params["b_hh"], jnp.float32)    # (H,)
    W_lin = jnp.asarray(params["W_lin"], jnp.float32)  # (A, H)  linear.weight
    b_lin = jnp.asarray(params["b_lin"], jnp.float32)  # (A,)

    H, I = W_ih.shape
    A = W_lin.shape[0]
    Wc = max(H, A)

    def pad_cols(m):
        return jnp.pad(m, ((0, 0), (0, Wc - m.shape[1])))

    w_all = jnp.concatenate([
        pad_cols(W_ih.T),                         # (I, Wc)
        pad_cols(W_hh.T),                         # (H, Wc)
        pad_cols(W_lin.T),                        # (H, Wc)
        pad_cols((b_ih + b_hh).reshape(1, H)),    # (1, Wc)
        pad_cols(b_lin.reshape(1, A)),            # (1, Wc)
    ], axis=0)                                    # (I + 2H + 2, Wc)

    return {"w_all": w_all,
            "input_size": int(I), "hidden_size": int(H), "n_actions": int(A)}


@functools.partial(jax.jit,
                   static_argnames=("input_size", "hidden_size", "n_actions"))
def _forward_impl(w_all, x, h0, *, input_size, hidden_size, n_actions):
    seq_len = x.shape[0]
    I, H, A = input_size, hidden_size, n_actions

    x32 = x.astype(jnp.float32)
    h0_2d = h0.reshape(1, H).astype(jnp.float32)

    kernel = functools.partial(_actor_rnn_kernel, seq_len=seq_len,
                               input_size=I, hidden_size=H, n_actions=A)

    # Advisory cost for XLA scheduling (roughly accounts for (8,128) padding).
    flops = 2 * seq_len * (I * H + H * H) + 2 * H * A
    transcendentals = seq_len * H + 2 * A
    bytes_accessed = 4 * (seq_len * max(I, 128) + w_all.shape[0] * 128
                          + 128 + 2 * _OUT_W)
    cost = pl.CostEstimate(flops=flops, transcendentals=transcendentals,
                           bytes_accessed=bytes_accessed)

    vmem = pl.BlockSpec(memory_space=pltpu.MemorySpace.VMEM)

    out = pl.pallas_call(
        kernel,
        out_shape=jax.ShapeDtypeStruct((2, _OUT_W), jnp.float32),
        in_specs=[vmem, vmem, vmem],
        out_specs=vmem,
        scratch_shapes=[pltpu.VMEM((seq_len, H), jnp.float32)],
        cost_estimate=cost,
    )(x32, w_all, h0_2d)

    logpi = out[0:1, 0:A]                         # (1, A)
    hn = out[1:2, 0:H].reshape(1, 1, H)           # (num_layers=1, 1, H)
    return logpi, hn


def actor_rnn_forward(prep, x, h0):
    """Equivalent of ActorNetwork_RNN.forward(input, hidden).

    x : (seq_len, input_size)  -- PyTorch `input` before .unsqueeze(1)
    h0: (num_layers=1, 1, H)   -- PyTorch `hidden`
    returns (log_softmax(logits) of shape (1, A), h_n of shape (1, 1, H))
    """
    if h0.shape[0] != 1:
        raise ValueError("kernel implements num_layers == 1 "
                         f"(got h0 leading dim {h0.shape[0]})")
    return _forward_impl(prep["w_all"], x, h0,
                         input_size=prep["input_size"],
                         hidden_size=prep["hidden_size"],
                         n_actions=prep["n_actions"])


def _reference_forward(params, x, h0):
    """Pure-JAX reference of the same math (for verification)."""
    h = h0.reshape(1, -1)
    for t in range(x.shape[0]):
        h = jnp.tanh(x[t:t + 1] @ params["W_ih"].T + params["b_ih"]
                     + h @ params["W_hh"].T + params["b_hh"])
    logits = h @ params["W_lin"].T + params["b_lin"]
    return jax.nn.log_softmax(logits, axis=-1), h.reshape(1, 1, -1)


def init_params(key, input_size, hidden_size, n_actions):
    """Deterministic PyTorch-style uniform init U(-1/sqrt(H), 1/sqrt(H))."""
    ks = jax.random.split(key, 6)
    bound = 1.0 / np.sqrt(hidden_size)
    u = lambda k, shape: jax.random.uniform(k, shape, jnp.float32, -bound, bound)
    return {
        "W_ih": u(ks[0], (hidden_size, input_size)),
        "W_hh": u(ks[1], (hidden_size, hidden_size)),
        "b_ih": u(ks[2], (hidden_size,)),
        "b_hh": u(ks[3], (hidden_size,)),
        "W_lin": u(ks[4], (n_actions, hidden_size)),
        "b_lin": u(ks[5], (n_actions,)),
    }


if __name__ == "__main__":
    input_size, hidden_size, n_actions = 16, 32, 8
    seq_len, num_layers = 8, 1

    key = jax.random.PRNGKey(0)
    k_param, k_x = jax.random.split(key)
    params = init_params(k_param, input_size, hidden_size, n_actions)

    prep = prepare_params(params)        # one-time packing; reused every call

    x = jax.random.normal(k_x, (seq_len, input_size), jnp.float32)
    h0 = jnp.zeros((num_layers, 1, hidden_size), jnp.float32)   # inithidden()

    logpi, hn = actor_rnn_forward(prep, x, h0)
    logpi = jax.block_until_ready(logpi)
    hn = jax.block_until_ready(hn)

    ref_logpi, ref_hn = _reference_forward(params, x, h0)
    ref_logpi = np.asarray(ref_logpi)
    ref_hn = np.asarray(ref_hn)

    # Kernel matmuls run at the default (one-pass bf16) MXU precision; the
    # pure-JAX reference may evaluate these tiny dots in full f32, so the
    # tolerance is sized for that (pass precision=HIGHEST in the kernel dots if
    # bit-level parity with an f32 reference is ever required).
    lp = np.asarray(logpi)
    hh = np.asarray(hn)
    assert lp.shape == (1, n_actions) and hh.shape == (1, 1, hidden_size)
    assert np.allclose(lp, ref_logpi, atol=5e-3), \
        f"logpi mismatch: max|d|={np.max(np.abs(lp - ref_logpi))}"
    assert np.allclose(hh, ref_hn, atol=5e-3), \
        f"hn mismatch: max|d|={np.max(np.abs(hh - ref_hn))}"

    print("KERNEL_OK")
</pallas_src>

<mosaic_0001>
module attributes {stable_mosaic.version = 11 : i64} {
  func.func @_actor_rnn_kernel(%arg0: memref<8x16xf32, #tpu.memory_space<vmem>>, %arg1: memref<82x32xf32, #tpu.memory_space<vmem>>, %arg2: memref<1x32xf32, #tpu.memory_space<vmem>>, %arg3: memref<2x128xf32, #tpu.memory_space<vmem>>, %arg4: memref<8x32xf32, #tpu.memory_space<vmem>>) attributes {dimension_semantics = [], scalar_prefetch = 0 : i64, scratch_operands = 1 : i64, tpu.core_type = #tpu.core_type<tc>} {
    %c0 = arith.constant 0 : index
    %c0_0 = arith.constant 0 : index
    %0 = vector.load %arg1[%c0, %c0_0] : memref<82x32xf32, #tpu.memory_space<vmem>>, vector<16x32xf32>
    %c16 = arith.constant 16 : index
    %c0_1 = arith.constant 0 : index
    %1 = vector.load %arg1[%c16, %c0_1] : memref<82x32xf32, #tpu.memory_space<vmem>>, vector<32x32xf32>
    %c48 = arith.constant 48 : index
    %c0_2 = arith.constant 0 : index
    %2 = vector.load %arg1[%c48, %c0_2] : memref<82x32xf32, #tpu.memory_space<vmem>>, vector<32x8xf32>
    %c80 = arith.constant 80 : index
    %c0_3 = arith.constant 0 : index
    %3 = vector.load %arg1[%c80, %c0_3] : memref<82x32xf32, #tpu.memory_space<vmem>>, vector<1x32xf32>
    %c81 = arith.constant 81 : index
    %c0_4 = arith.constant 0 : index
    %4 = vector.load %arg1[%c81, %c0_4] : memref<82x32xf32, #tpu.memory_space<vmem>>, vector<1x8xf32>
    %c0_5 = arith.constant 0 : index
    %c0_6 = arith.constant 0 : index
    %5 = vector.load %arg0[%c0_5, %c0_6] : memref<8x16xf32, #tpu.memory_space<vmem>>, vector<8x16xf32>
    %cst = arith.constant dense<0.000000e+00> : vector<8x32xf32>
    %6 = tpu.matmul %5, %0, %cst {dimension_numbers = #tpu.dot_dimension_numbers<[1], [0], [0], [1], [0, 0, 1, 1], [], []>} : vector<8x16xf32>, vector<16x32xf32>, vector<8x32xf32> -> vector<8x32xf32>
    %7 = vector.broadcast %3 : vector<1x32xf32> to vector<8x32xf32>
    %8 = arith.addf %6, %7 : vector<8x32xf32>
    %c0_7 = arith.constant 0 : index
    %c0_8 = arith.constant 0 : index
    %9 = vector.load %arg4[%c0_7, %c0_8] : memref<8x32xf32, #tpu.memory_space<vmem>>, vector<8x32xf32>
    tpu.vector_store %arg4[%c0_7, %c0_8], %8 {strides = array<i32>} : memref<8x32xf32, #tpu.memory_space<vmem>>, vector<8x32xf32>,
    %c0_9 = arith.constant 0 : index
    %c0_10 = arith.constant 0 : index
    %10 = vector.load %arg2[%c0_9, %c0_10] : memref<1x32xf32, #tpu.memory_space<vmem>>, vector<1x32xf32>
    %c0_11 = arith.constant 0 : index
    %c0_12 = arith.constant 0 : index
    %11 = vector.load %arg4[%c0_11, %c0_12] : memref<8x32xf32, #tpu.memory_space<vmem>>, vector<1x32xf32>
    %cst_13 = arith.constant dense<0.000000e+00> : vector<1x32xf32>
    %12 = tpu.matmul %10, %1, %cst_13 {dimension_numbers = #tpu.dot_dimension_numbers<[1], [0], [0], [1], [0, 0, 1, 1], [], []>} : vector<1x32xf32>, vector<32x32xf32>, vector<1x32xf32> -> vector<1x32xf32>
    %13 = arith.addf %11, %12 : vector<1x32xf32>
    %14 = math.tanh %13 : vector<1x32xf32>
    %c1 = arith.constant 1 : index
    %c0_14 = arith.constant 0 : index
    %15 = vector.load %arg4[%c1, %c0_14] : memref<8x32xf32, #tpu.memory_space<vmem>>, vector<1x32xf32>
    %cst_15 = arith.constant dense<0.000000e+00> : vector<1x32xf32>
    %16 = tpu.matmul %14, %1, %cst_15 {dimension_numbers = #tpu.dot_dimension_numbers<[1], [0], [0], [1], [0, 0, 1, 1], [], []>} : vector<1x32xf32>, vector<32x32xf32>, vector<1x32xf32> -> vector<1x32xf32>
    %17 = arith.addf %15, %16 : vector<1x32xf32>
    %18 = math.tanh %17 : vector<1x32xf32>
    %c2 = arith.constant 2 : index
    %c0_16 = arith.constant 0 : index
    %19 = vector.load %arg4[%c2, %c0_16] : memref<8x32xf32, #tpu.memory_space<vmem>>, vector<1x32xf32>
    %cst_17 = arith.constant dense<0.000000e+00> : vector<1x32xf32>
    %20 = tpu.matmul %18, %1, %cst_17 {dimension_numbers = #tpu.dot_dimension_numbers<[1], [0], [0], [1], [0, 0, 1, 1], [], []>} : vector<1x32xf32>, vector<32x32xf32>, vector<1x32xf32> -> vector<1x32xf32>
    %21 = arith.addf %19, %20 : vector<1x32xf32>
    %22 = math.tanh %21 : vector<1x32xf32>
    %c3 = arith.constant 3 : index
    %c0_18 = arith.constant 0 : index
    %23 = vector.load %arg4[%c3, %c0_18] : memref<8x32xf32, #tpu.memory_space<vmem>>, vector<1x32xf32>
    %cst_19 = arith.constant dense<0.000000e+00> : vector<1x32xf32>
    %24 = tpu.matmul %22, %1, %cst_19 {dimension_numbers = #tpu.dot_dimension_numbers<[1], [0], [0], [1], [0, 0, 1, 1], [], []>} : vector<1x32xf32>, vector<32x32xf32>, vector<1x32xf32> -> vector<1x32xf32>
    %25 = arith.addf %23, %24 : vector<1x32xf32>
    %26 = math.tanh %25 : vector<1x32xf32>
    %c4 = arith.constant 4 : index
    %c0_20 = arith.constant 0 : index
    %27 = vector.load %arg4[%c4, %c0_20] : memref<8x32xf32, #tpu.memory_space<vmem>>, vector<1x32xf32>
    %cst_21 = arith.constant dense<0.000000e+00> : vector<1x32xf32>
    %28 = tpu.matmul %26, %1, %cst_21 {dimension_numbers = #tpu.dot_dimension_numbers<[1], [0], [0], [1], [0, 0, 1, 1], [], []>} : vector<1x32xf32>, vector<32x32xf32>, vector<1x32xf32> -> vector<1x32xf32>
    %29 = arith.addf %27, %28 : vector<1x32xf32>
    %30 = math.tanh %29 : vector<1x32xf32>
    %c5 = arith.constant 5 : index
    %c0_22 = arith.constant 0 : index
    %31 = vector.load %arg4[%c5, %c0_22] : memref<8x32xf32, #tpu.memory_space<vmem>>, vector<1x32xf32>
    %cst_23 = arith.constant dense<0.000000e+00> : vector<1x32xf32>
    %32 = tpu.matmul %30, %1, %cst_23 {dimension_numbers = #tpu.dot_dimension_numbers<[1], [0], [0], [1], [0, 0, 1, 1], [], []>} : vector<1x32xf32>, vector<32x32xf32>, vector<1x32xf32> -> vector<1x32xf32>
    %33 = arith.addf %31, %32 : vector<1x32xf32>
    %34 = math.tanh %33 : vector<1x32xf32>
    %c6 = arith.constant 6 : index
    %c0_24 = arith.constant 0 : index
    %35 = vector.load %arg4[%c6, %c0_24] : memref<8x32xf32, #tpu.memory_space<vmem>>, vector<1x32xf32>
    %cst_25 = arith.constant dense<0.000000e+00> : vector<1x32xf32>
    %36 = tpu.matmul %34, %1, %cst_25 {dimension_numbers = #tpu.dot_dimension_numbers<[1], [0], [0], [1], [0, 0, 1, 1], [], []>} : vector<1x32xf32>, vector<32x32xf32>, vector<1x32xf32> -> vector<1x32xf32>
    %37 = arith.addf %35, %36 : vector<1x32xf32>
    %38 = math.tanh %37 : vector<1x32xf32>
    %c7 = arith.constant 7 : index
    %c0_26 = arith.constant 0 : index
    %39 = vector.load %arg4[%c7, %c0_26] : memref<8x32xf32, #tpu.memory_space<vmem>>, vector<1x32xf32>
    %cst_27 = arith.constant dense<0.000000e+00> : vector<1x32xf32>
    %40 = tpu.matmul %38, %1, %cst_27 {dimension_numbers = #tpu.dot_dimension_numbers<[1], [0], [0], [1], [0, 0, 1, 1], [], []>} : vector<1x32xf32>, vector<32x32xf32>, vector<1x32xf32> -> vector<1x32xf32>
    %41 = arith.addf %39, %40 : vector<1x32xf32>
    %42 = math.tanh %41 : vector<1x32xf32>
    %cst_28 = arith.constant dense<0.000000e+00> : vector<1x8xf32>
    %43 = tpu.matmul %42, %2, %cst_28 {dimension_numbers = #tpu.dot_dimension_numbers<[1], [0], [0], [1], [0, 0, 1, 1], [], []>} : vector<1x32xf32>, vector<32x8xf32>, vector<1x8xf32> -> vector<1x8xf32>
    %44 = arith.addf %43, %4 : vector<1x8xf32>
    %cst_29 = arith.constant dense<0xFF800000> : vector<1xf32>
    %45 = vector.multi_reduction <maximumf>, %44, %cst_29 [1] : vector<1x8xf32> to vector<1xf32>
    %46 = vector.shape_cast %45 : vector<1xf32> to vector<1x1xf32>
    %47 = vector.broadcast %46 : vector<1x1xf32> to vector<1x8xf32>
    %48 = arith.subf %44, %47 : vector<1x8xf32>
    %49 = math.exp %48 : vector<1x8xf32>
    %cst_30 = arith.constant dense<0.000000e+00> : vector<1xf32>
    %50 = vector.multi_reduction <add>, %49, %cst_30 [1] : vector<1x8xf32> to vector<1xf32>
    %51 = vector.shape_cast %50 : vector<1xf32> to vector<1x1xf32>
    %52 = math.log %51 : vector<1x1xf32>
    %53 = vector.broadcast %52 : vector<1x1xf32> to vector<1x8xf32>
    %54 = arith.subf %48, %53 : vector<1x8xf32>
    %cst_31 = arith.constant 0.000000e+00 : f32
    %55 = vector.broadcast %cst_31 : f32 to vector<2x128xf32>
    %c0_32 = arith.constant 0 : index
    %c0_33 = arith.constant 0 : index
    %56 = vector.load %arg3[%c0_32, %c0_33] : memref<2x128xf32, #tpu.memory_space<vmem>>, vector<2x128xf32>
    tpu.vector_store %arg3[%c0_32, %c0_33], %55 {strides = array<i32>} : memref<2x128xf32, #tpu.memory_space<vmem>>, vector<2x128xf32>,
    %c0_34 = arith.constant 0 : index
    %c0_35 = arith.constant 0 : index
    %57 = vector.load %arg3[%c0_34, %c0_35] : memref<2x128xf32, #tpu.memory_space<vmem>>, vector<1x8xf32>
    tpu.vector_store %arg3[%c0_34, %c0_35], %54 {strides = array<i32>} : memref<2x128xf32, #tpu.memory_space<vmem>>, vector<1x8xf32>,
    %c1_36 = arith.constant 1 : index
    %c0_37 = arith.constant 0 : index
    %58 = vector.load %arg3[%c1_36, %c0_37] : memref<2x128xf32, #tpu.memory_space<vmem>>, vector<1x32xf32>
    tpu.vector_store %arg3[%c1_36, %c0_37], %42 {strides = array<i32>} : memref<2x128xf32, #tpu.memory_space<vmem>>, vector<1x32xf32>,
    return
  }
}

</mosaic_0001>

<bundles_post_ra>
// kernel: _forward_impl.1
= control target key start
LH: loop header
LB: loop body
LE: loop exit
PB: predicated region body
PF: predicated region fallthrough
CT: control target
= control target key end

     0   :  { %v1055_v0 = vmov 0.0|0.0   ;;  %vm1056_vm0 = vmmov 0   ;;  %v1057_v3 = vmov 0.0   ;;  %vm31_vm1 = vcmask 130048   ;;  %s1202_s1 = inlined_call_operand.vmem [shape: f32[82,32], index: 1, kind: input, shape index: {}]   ;;  %s1203_s0 = inlined_call_operand.vmem [shape: f32[8,16], index: 0, kind: input, shape index: {}]   ;;  %s1204_s2 = inlined_call_operand.vmem [shape: f32[1,32], index: 2, kind: input, shape index: {}]   ;;  %s1205_s3 = inlined_call_operand.vmem [shape: f32[2,128], index: 3, kind: output, shape index: {}]  }
   0x1   :  { %975 = vmatprep.subr.bf16.mxu0 %v1055_v0  ;;  %v14_v1 = vld [vmem:[%s1202_s1] sm:$0xff]  ;;  %v15_v2 = vld [vmem:[%s1202_s1 + $0x8] sm:$0xff]  ;;  %873 = vmatprep.mubr.msk.f32.mxu0 %vm1056_vm0, %v1057_v3  ;;  %v16_v5 = vld [vmem:[%s1202_s1 + $0x10] sm:$0xff]  ;;  %vm105_vm2 = vcmask 261120   ;;  %802 = vst [vmem:[%s1205_s3] sm:$0x3] %v1057_v3  ;;  %vm804_vm3 = vcmask 253952  }
   0x2   :  { %v976_v4 = vpack.c.bf16 %v15_v2, %v14_v1  ;;  %978 = vmatprep.subr.bf16.mxu1 %v1055_v0  ;;  %v17_v6 = vld [vmem:[%s1202_s1 + $0x18] sm:$0xff]  ;;  %v18_v7 = vld [vmem:[%s1202_s1 + $0x20] sm:$0xff]  ;;  %884 = vmatprep.mubr.msk.f32.mxu1 %vm1056_vm0, %v1057_v3  ;;  %v19_v9 = vld [vmem:[%s1202_s1 + $0x28] sm:$0xff]  ;;  %vm789_vm4 = vcmask 57344  }
   0x3   :  { %v1099_v8 = vpack.c.bf16 %v17_v6, %v16_v5  ;;  %v26_v10 = vld [vmem:[%s1203_s0] sm:$0xff]  ;;  %v1108_v11 = vpack.c.bf16 %v19_v9, %v18_v7  ;;  %v810_v13 = vld [vmem:[%s1202_s1 + $0x50] ss:$0 sm:$0xff]  ;;  %v21_v53 = vld [vmem:[%s1202_s1 + $0x38] sm:$0xff] }
   0x4   :  { %977 = vmatpush3.bf16.msra.mxu0 %v976_v4  ;;  %v107_v12 = vld [vmem:[%s1204_s2] sm:$0x1]  ;;  %v20_v52 = vld [vmem:[%s1202_s1 + $0x30] sm:$0xff]  ;;  %v23_v56 = vld [vmem:[%s1202_s1 + $0x48] sm:$0xff] }
   0x5   :  { %980 = vmatpush3.bf16.msra.mxu1 %v1099_v8  ;;  %984 = vmatprep.subr.bf16.mxu0 %v1055_v0  ;;  %v22_v54 = vld [vmem:[%s1202_s1 + $0x40] sm:$0xff]  ;;  %v1027_v55 = vpack.c.bf16 %v21_v53, %v20_v52  ;;  %v25_v63 = vld [vmem:[%s1202_s1 + $0x51] sm:$0x1] }
   0x6   :  { %981 = vmatprep.subr.bf16.mxu1 %v1055_v0  ;;  %v1030_v57 = vpack.c.bf16 %v23_v56, %v22_v54 }
   0x7   :  { %874 = vmatmul.mubr.msk.f32.vlgmr.msra.gmra.mrb[0].mxu0 %vm31_vm1, %v26_v10 }
   0x8   :  { %986 = vmatpush3.bf16.msra.mxu0 %v1099_v8  ;;  %895 = vmatprep.mubr.msk.f32.mxu0 %vm1056_vm0, %v1057_v3 }
   0x9   :  { %983 = vmatpush3.bf16.msra.mxu1 %v1108_v11  ;;  %987 = vmatprep.subr.bf16.mxu0 %v1055_v0 }
   0xa   :  { %990 = vmatprep.subr.bf16.mxu1 %v1055_v0 }
   0xc   :  { %885 = vmatmul.mubr.msk.f32.vlgmr.msra.gmra.mrb[0].mxu1 %vm105_vm2, %v107_v12  ;;  %989 = vmatpush3.bf16.msra.mxu0 %v1108_v11 }
   0xd   :  { %992 = vmatpush3.bf16.msra.mxu1 %v1099_v8  ;;  %906 = vmatprep.mubr.msk.f32.mxu1 %vm1056_vm0, %v1057_v3 }
   0xe   :  { %993 = vmatprep.subr.bf16.mxu1 %v1055_v0  ;;  %996 = vmatprep.subr.bf16.mxu0 %v1055_v0 }
  0x11   :  { %995 = vmatpush3.bf16.msra.mxu1 %v1108_v11 }
  0x12   :  { %1002 = vmatprep.subr.bf16.mxu1 %v1055_v0 }
  0xda   :  { %v101_v14 = vpop.f32.mrb[0].mxu0 }
  0xdb   :  { %v102_v15 = vadd.f32 %v810_v13, %v101_v14  ;;  %v875_v16 = vpop.f32.mrb[1].mxu0 }
  0xdd   :  { %106 = vst.msk [vmem:[#allocation2] sm:$0xff] %vm105_vm2, %v102_v15 }
  0xdf   :  { %v178_v17 = vpop.f32.mrb[0].mxu1 }
  0xe0   :  { %v886_v18 = vpop.f32.mrb[1].mxu1 }
  0xe4   :  { %v108_v19 = vld [vmem:[#allocation2] sm:$0x1]  ;;  %v184_v22 = vld [vmem:[#allocation2 + $0x1] sm:$0x1]  ;;  %v260_v27 = vld [vmem:[#allocation2 + $0x2] sm:$0x1] }
  0xe5   :  { %v182_v20 = vadd.f32 %v178_v17, %v108_v19  ;;  %v336_v32 = vld [vmem:[#allocation2 + $0x3] sm:$0x1]  ;;  %v412_v37 = vld [vmem:[#allocation2 + $0x4] sm:$0x1]  ;;  %v488_v42 = vld [vmem:[#allocation2 + $0x5] sm:$0x1] }
  0xe6   :  { %v564_v47 = vld [vmem:[#allocation2 + $0x6] sm:$0x1]  ;;  %v640_v58 = vld [vmem:[#allocation2 + $0x7] sm:$0x1] }
  0xe7   :  { %1035 = vtanh.f32 %v182_v20 }
  0xf1   :  { %v1036_v21 = vpop.eup %1035 }
  0xf2   :  { %896 = vmatmul.mubr.msk.f32.vlgmr.msra.gmra.mrb[2].mxu0 %vm105_vm2, %v1036_v21 }
  0xf3   :  { %998 = vmatpush3.bf16.msra.mxu0 %v1099_v8  ;;  %917 = vmatprep.mubr.msk.f32.mxu0 %vm1056_vm0, %v1057_v3 }
  0xf4   :  { %999 = vmatprep.subr.bf16.mxu0 %v1055_v0 }
  0xf7   :  { %1001 = vmatpush3.bf16.msra.mxu0 %v1108_v11 }
  0xf8   :  { %1008 = vmatprep.subr.bf16.mxu0 %v1055_v0 }
 0x1c5   :  { %v254_v23 = vpop.f32.mrb[2].mxu0 }
 0x1c6   :  { %v258_v24 = vadd.f32 %v254_v23, %v184_v22  ;;  %v897_v25 = vpop.f32.mrb[3].mxu0 }
 0x1c8   :  { %1037 = vtanh.f32 %v258_v24 }
 0x1d2   :  { %v1038_v26 = vpop.eup %1037 }
 0x1d3   :  { %907 = vmatmul.mubr.msk.f32.vlgmr.msra.gmra.mrb[2].mxu1 %vm105_vm2, %v1038_v26 }
 0x1d4   :  { %1004 = vmatpush3.bf16.msra.mxu1 %v1099_v8  ;;  %928 = vmatprep.mubr.msk.f32.mxu1 %vm1056_vm0, %v1057_v3 }
 0x1d5   :  { %1005 = vmatprep.subr.bf16.mxu1 %v1055_v0 }
 0x1d8   :  { %1007 = vmatpush3.bf16.msra.mxu1 %v1108_v11 }
 0x1d9   :  { %1014 = vmatprep.subr.bf16.mxu1 %v1055_v0 }
 0x2a6   :  { %v330_v28 = vpop.f32.mrb[2].mxu1 }
 0x2a7   :  { %v334_v29 = vadd.f32 %v330_v28, %v260_v27  ;;  %v908_v30 = vpop.f32.mrb[3].mxu1 }
 0x2a9   :  { %1039 = vtanh.f32 %v334_v29 }
 0x2b3   :  { %v1040_v31 = vpop.eup %1039 }
 0x2b4   :  { %918 = vmatmul.mubr.msk.f32.vlgmr.msra.gmra.mrb[4].mxu0 %vm105_vm2, %v1040_v31 }
 0x2b5   :  { %1010 = vmatpush3.bf16.msra.mxu0 %v1099_v8  ;;  %939 = vmatprep.mubr.msk.f32.mxu0 %vm1056_vm0, %v1057_v3 }
 0x2b6   :  { %1011 = vmatprep.subr.bf16.mxu0 %v1055_v0 }
 0x2b9   :  { %1013 = vmatpush3.bf16.msra.mxu0 %v1108_v11 }
 0x2ba   :  { %1020 = vmatprep.subr.bf16.mxu0 %v1055_v0 }
 0x387   :  { %v406_v33 = vpop.f32.mrb[4].mxu0 }
 0x388   :  { %v410_v34 = vadd.f32 %v406_v33, %v336_v32  ;;  %v919_v35 = vpop.f32.mrb[5].mxu0 }
 0x38a   :  { %1041 = vtanh.f32 %v410_v34 }
 0x394   :  { %v1042_v36 = vpop.eup %1041 }
 0x395   :  { %929 = vmatmul.mubr.msk.f32.vlgmr.msra.gmra.mrb[4].mxu1 %vm105_vm2, %v1042_v36 }
 0x396   :  { %1016 = vmatpush3.bf16.msra.mxu1 %v1099_v8  ;;  %950 = vmatprep.mubr.msk.f32.mxu1 %vm1056_vm0, %v1057_v3 }
 0x397   :  { %1017 = vmatprep.subr.bf16.mxu1 %v1055_v0 }
 0x39a   :  { %1019 = vmatpush3.bf16.msra.mxu1 %v1108_v11 }
 0x39b   :  { %1026 = vmatprep.subr.bf16.mxu1 %v1055_v0 }
 0x468   :  { %v482_v38 = vpop.f32.mrb[4].mxu1 }
 0x469   :  { %v486_v39 = vadd.f32 %v482_v38, %v412_v37  ;;  %v930_v40 = vpop.f32.mrb[5].mxu1 }
 0x46b   :  { %1043 = vtanh.f32 %v486_v39 }
 0x475   :  { %v1044_v41 = vpop.eup %1043 }
 0x476   :  { %940 = vmatmul.mubr.msk.f32.vlgmr.msra.gmra.mrb[6].mxu0 %vm105_vm2, %v1044_v41 }
 0x477   :  { %1022 = vmatpush3.bf16.msra.mxu0 %v1099_v8  ;;  %961 = vmatprep.mubr.msk.f32.mxu0 %vm1056_vm0, %v1057_v3 }
 0x478   :  { %1023 = vmatprep.subr.bf16.mxu0 %v1055_v0 }
 0x47b   :  { %1025 = vmatpush3.bf16.msra.mxu0 %v1108_v11 }
 0x549   :  { %v558_v43 = vpop.f32.mrb[6].mxu0 }
 0x54a   :  { %v562_v44 = vadd.f32 %v558_v43, %v488_v42  ;;  %v941_v45 = vpop.f32.mrb[7].mxu0 }
 0x54c   :  { %1045 = vtanh.f32 %v562_v44 }
 0x556   :  { %v1046_v46 = vpop.eup %1045 }
 0x557   :  { %951 = vmatmul.mubr.msk.f32.vlgmr.msra.gmra.mrb[6].mxu1 %vm105_vm2, %v1046_v46 }
 0x558   :  { %972 = vmatprep.mubr.msk.f32.mxu1 %vm1056_vm0, %v1057_v3  ;;  %1028 = vmatpush3.bf16.msra.mxu1 %v1027_v55 }
 0x559   :  { %1029 = vmatprep.subr.bf16.mxu1 %v1055_v0 }
 0x55c   :  { %1031 = vmatpush3.bf16.msra.mxu1 %v1030_v57 }
 0x62a   :  { %v634_v48 = vpop.f32.mrb[6].mxu1 }
 0x62b   :  { %v638_v49 = vadd.f32 %v634_v48, %v564_v47  ;;  %v952_v50 = vpop.f32.mrb[7].mxu1 }
 0x62d   :  { %1047 = vtanh.f32 %v638_v49 }
 0x637   :  { %v1048_v51 = vpop.eup %1047 }
 0x638   :  { %962 = vmatmul.mubr.msk.f32.vlgmr.msra.gmra.mrb[8].mxu0 %vm105_vm2, %v1048_v51 }
 0x70b   :  { %v710_v59 = vpop.f32.mrb[8].mxu0 }
 0x70c   :  { %v714_v60 = vadd.f32 %v710_v59, %v640_v58  ;;  %v963_v61 = vpop.f32.mrb[9].mxu0 }
 0x70e   :  { %1049 = vtanh.f32 %v714_v60 }
 0x718   :  { %v1050_v62 = vpop.eup %1049 }
 0x719   :  { %973 = vmatmul.mubr.msk.f32.vlgmr.msra.gmra.mrb[8].mxu1 %vm105_vm2, %v1050_v62  ;;  %805 = vst.msk [vmem:[%s1205_s3 + $0x1] sm:$0x1] %vm804_vm3, %v1050_v62 }
 0x7ec   :  { %v785_v0 = vpop.f32.mrb[8].mxu1 }
 0x7ed   :  { %v786_v1 = vadd.f32 %v785_v0, %v25_v63  ;;  %v974_v2 = vpop.f32.mrb[9].mxu1 }
 0x7ef   :  { %v790_v3 = vsel %vm789_vm4, %v786_v1, -inf }
 0x7f0   :  { %791 = vmax.xlane.f32.xlu0 %v790_v3 }
 0x87d   :  { %v792_v4 = vpop.xlane.xlu0 %791 }
 0x87e   :  { %v793_v5 = vsub.f32 %v786_v1, %v792_v4 }
 0x880   :  { %v794_v6 = vmul.f32 1.442695, %v793_v5 }
 0x882   :  { %1051 = vpow2.f32 %v794_v6 }
 0x88c   :  { %v1052_v7 = vpop.eup %1051 }
 0x88d   :  { %v796_v8 = vsel %vm789_vm4, %v1052_v7, 0.0 }
 0x88e   :  { %797 = vadd.xlane.f32.xlu0 %v796_v8 }
 0x91b   :  { %v798_v9 = vpop.xlane.xlu0 %797 }
 0x91c   :  { %1053 = vlog2.f32 %v798_v9 }
 0x926   :  { %v1054_v10 = vpop.eup %1053 }
 0x927   :  { %v800_v11 = vmul.f32 0.6931472, %v1054_v10 }
 0x929   :  { %v801_v12 = vsub.f32 %v793_v5, %v800_v11 }
 0x92b   :  { %803 = vst.msk [vmem:[%s1205_s3] sm:$0x1] %vm789_vm4, %v801_v12 }

</bundles_post_ra>
